<compile_context>
chip_gen: v7x
topology: tpu7x:2x2x1
jax: 0.10.0
libtpu: 0.0.40
codegen_flags: <defaults>
</compile_context>

<pallas_src>
import functools

import jax
import jax.numpy as jnp
from jax import lax
from jax.experimental import pallas as pl
from jax.experimental.pallas import tpu as pltpu


# ----------------------------------------------------------------------------
# Chip-aware defaults (v5e/v6e: 128 MiB VMEM -> bigger tiles; v7x: 64 MiB).
# ----------------------------------------------------------------------------
def _detect_vmem_bytes():
    try:
        return int(pltpu.get_tpu_info().vmem_capacity_bytes)
    except Exception:
        return 64 * 1024 * 1024          # conservative (v7x-sized) fallback


_VMEM_BYTES = _detect_vmem_bytes()
_BIG_VMEM = _VMEM_BYTES >= 100 * 1024 * 1024
_MATMUL_TILE = 512 if _BIG_VMEM else 256   # generic linear tiles (multiple of 128)
_ROW_TILE = 512 if _BIG_VMEM else 128      # row tile for the fused proj+FFN+LN kernel
_VMEM_LIMIT = (96 if _BIG_VMEM else 48) * 1024 * 1024


def _round_up(x, m):
    return ((x + m - 1) // m) * m


def _pick_tile(dim, target):
    """Largest power-of-two-ish tile <= target that divides dim (else full dim)."""
    if dim <= target:
        return dim
    t = target
    while t >= 8:
        if dim % t == 0:
            return t
        t //= 2
    return dim


# ----------------------------------------------------------------------------
# Kernel: tiled linear  (x @ W + b, optional ReLU), bf16 MXU / f32 accumulate
# ----------------------------------------------------------------------------
def _matmul_bias_kernel(x_ref, w_ref, b_ref, o_ref, acc_ref, *, activation):
    @pl.when(pl.program_id(2) == 0)
    def _():
        acc_ref[...] = jnp.zeros_like(acc_ref)

    acc_ref[...] += jnp.dot(x_ref[...], w_ref[...],
                            preferred_element_type=jnp.float32)

    @pl.when(pl.program_id(2) == pl.num_programs(2) - 1)
    def _():
        y = acc_ref[...] + b_ref[...]
        if activation == "relu":
            y = jnp.maximum(y, 0.0)
        o_ref[...] = y.astype(o_ref.dtype)


def linear(x, w, b, activation=None, out_dtype=jnp.float32,
           tm=None, tn=None, tk=None):
    """x: (M, K), w: (K, N) bf16, b: (N,) f32 -> (M, N) out_dtype.

    Pads M / N / K up to tile multiples (masked tail is sliced off) so the
    tiled, double-buffered path is always used — never "whole dim as 1 block".
    """
    M, K = x.shape
    N = w.shape[1]
    tm = tm or _MATMUL_TILE
    tn = tn or _MATMUL_TILE
    tk = tk or _MATMUL_TILE

    x = x.astype(jnp.bfloat16)                 # cast OUTSIDE the kernel
    w = w.astype(jnp.bfloat16)
    b = b.astype(jnp.float32).reshape(1, N)

    tm = min(tm, _round_up(M, 8))
    tn = N if N < tn else tn                   # full dim when small (always legal)
    tk = K if K < tk else tk
    Mp, Np, Kp = _round_up(M, tm), _round_up(N, tn), _round_up(K, tk)
    if Mp != M or Kp != K:
        x = jnp.pad(x, ((0, Mp - M), (0, Kp - K)))
    if Kp != K or Np != N:
        w = jnp.pad(w, ((0, Kp - K), (0, Np - N)))
    if Np != N:
        b = jnp.pad(b, ((0, 0), (0, Np - N)))

    out = pl.pallas_call(
        functools.partial(_matmul_bias_kernel, activation=activation),
        out_shape=jax.ShapeDtypeStruct((Mp, Np), out_dtype),
        grid_spec=pltpu.PrefetchScalarGridSpec(
            num_scalar_prefetch=0,
            grid=(Mp // tm, Np // tn, Kp // tk),
            in_specs=[
                pl.BlockSpec((tm, tk), lambda i, j, k: (i, k)),
                pl.BlockSpec((tk, tn), lambda i, j, k: (k, j)),
                pl.BlockSpec((1, tn), lambda i, j, k: (0, j)),
            ],
            out_specs=pl.BlockSpec((tm, tn), lambda i, j, k: (i, j)),
            scratch_shapes=[pltpu.VMEM((tm, tn), jnp.float32)],
        ),
        compiler_params=pltpu.CompilerParams(
            dimension_semantics=("parallel", "parallel", "arbitrary"),
            vmem_limit_bytes=_VMEM_LIMIT),
    )(x, w, b)
    if Mp != M or Np != N:
        out = out[:M, :N]
    return out


# ----------------------------------------------------------------------------
# Kernel: flash-style attention with spatio-temporal bias.
#   grid = (B, L // tq); q block (H, tq, Dh); K/V/bias columns full-L.
#   Heads are a batched einsum dimension; softmax normalization is applied
#   after the AV matmul; output is one lane-dense (tq, H*Dh) block.
# ----------------------------------------------------------------------------
def _attn_kernel(q_ref, k_ref, v_ref, tmat_ref, dmat_ref, mask_ref, o_ref,
                 *, lambda2):
    q = q_ref[0]                               # (H, tq, Dh) bf16
    k = k_ref[0]                               # (H, L,  Dh) bf16
    v = v_ref[0]                               # (H, L,  Dh) bf16
    H, tq, Dh = q.shape
    scale = 1.0 / float(Dh) ** 0.5

    # NOTE: RED's exact spatio-temporal attention-bias formula is not
    # available; we use an additive log-decay bias mixed by lambda2 (documented
    # assumption).  Built in-kernel from bf16 tiles (upcast to f32 for the
    # log) — the (B, L, L) bias tensor is never written to HBM.
    bias = -(lambda2 * jnp.log(1.0 + tmat_ref[0].astype(jnp.float32))
             + (1.0 - lambda2) * jnp.log(1.0 + dmat_ref[0].astype(jnp.float32)))
    bias = bias + (1.0 - mask_ref[0].astype(jnp.float32)) * (-1e9)   # (tq, L)

    s = jnp.einsum('hqd,hkd->hqk', q * scale, k,
                   preferred_element_type=jnp.float32) + bias[None]  # (H, tq, L)
    m = jnp.max(s, axis=-1, keepdims=True)
    p = jnp.exp(s - m)
    denom = jnp.sum(p, axis=-1, keepdims=True)
    o = jnp.einsum('hqk,hkd->hqd', p.astype(jnp.bfloat16), v,
                   preferred_element_type=jnp.float32)               # (H, tq, Dh)
    o = o * pl.reciprocal(denom, approx=True)      # normalize AFTER AV (L*Dh muls)

    # Static per-head writes into the lane-dense (tq, H*Dh) output block.
    for h in range(H):
        o_ref[0, :, h * Dh:(h + 1) * Dh] = o[h].astype(o_ref.dtype)


def fused_attention(qkv, temporal_mat, dis_mat, mask3, *, num_heads, lambda2,
                    tq=128):
    """qkv: (B, L, 3D) bf16; temporal/dis_mat: (B, L, L) bf16; mask3: (B,1,L)."""
    B, L, threeD = qkv.shape
    D = threeD // 3
    Dh = D // num_heads

    q, k, v = jnp.split(qkv, 3, axis=-1)       # plain-JAX head split (done once)
    def to_heads(t):
        return t.reshape(B, L, num_heads, Dh).transpose(0, 2, 1, 3)   # (B,H,L,Dh)
    q, k, v = to_heads(q), to_heads(k), to_heads(v)

    tq = _pick_tile(L, tq)
    return pl.pallas_call(
        functools.partial(_attn_kernel, lambda2=float(lambda2)),
        out_shape=jax.ShapeDtypeStruct((B, L, D), jnp.bfloat16),
        grid=(B, L // tq),
        in_specs=[
            pl.BlockSpec((1, num_heads, tq, Dh), lambda b, qi: (b, 0, qi, 0)),
            pl.BlockSpec((1, num_heads, L, Dh), lambda b, qi: (b, 0, 0, 0)),
            pl.BlockSpec((1, num_heads, L, Dh), lambda b, qi: (b, 0, 0, 0)),
            pl.BlockSpec((1, tq, L), lambda b, qi: (b, qi, 0)),
            pl.BlockSpec((1, tq, L), lambda b, qi: (b, qi, 0)),
            pl.BlockSpec((1, 1, L), lambda b, qi: (b, 0, 0)),
        ],
        out_specs=pl.BlockSpec((1, tq, D), lambda b, qi: (b, qi, 0)),
        compiler_params=pltpu.CompilerParams(
            dimension_semantics=("parallel", "parallel"),
            vmem_limit_bytes=_VMEM_LIMIT),
    )(q, k, v, temporal_mat, dis_mat, mask3)


# ----------------------------------------------------------------------------
# Kernel: O-projection + residual + LN1 + FFN (W1/ReLU/W2) + residual + LN2,
# all fused — one HBM round trip per layer for the token stream.
# ----------------------------------------------------------------------------
def _post_attn_ffn_kernel(attn_ref, res_ref, wo_ref, bo_ref, g1_ref, be1_ref,
                          w1_ref, b1_ref, w2_ref, b2_ref, g2_ref, be2_ref,
                          o_ref):
    def layer_norm(vv, g, be):
        mean = jnp.mean(vv, axis=-1, keepdims=True)
        var = jnp.mean(jnp.square(vv - mean), axis=-1, keepdims=True)
        return (vv - mean) * lax.rsqrt(var + 1e-5) * g + be

    # O-projection + residual + LN1 (f32 epilogue math).
    t = jnp.dot(attn_ref[...], wo_ref[...],
                preferred_element_type=jnp.float32) + bo_ref[...]
    h = layer_norm(res_ref[...].astype(jnp.float32) + t, g1_ref[...], be1_ref[...])

    # FFN: the (tm, F) intermediate stays in VMEM.
    u = jnp.dot(h.astype(jnp.bfloat16), w1_ref[...],
                preferred_element_type=jnp.float32) + b1_ref[...]
    u = jnp.maximum(u, 0.0)
    y = jnp.dot(u.astype(jnp.bfloat16), w2_ref[...],
                preferred_element_type=jnp.float32) + b2_ref[...]
    o_ref[...] = layer_norm(h + y, g2_ref[...], be2_ref[...]).astype(o_ref.dtype)


def post_attn_ffn(attn, res, p, tm=None):
    """LN2(LN1(res + attn@Wo + bo) + FFN(...)); attn/res: (M, D) bf16."""
    M, D = attn.shape
    F = p["W1"].shape[1]
    tm = tm or _ROW_TILE
    tm = min(tm, _round_up(M, 8))
    Mp = _round_up(M, tm)
    if Mp != M:
        attn = jnp.pad(attn, ((0, Mp - M), (0, 0)))
        res = jnp.pad(res, ((0, Mp - M), (0, 0)))

    out = pl.pallas_call(
        _post_attn_ffn_kernel,
        out_shape=jax.ShapeDtypeStruct((Mp, D), jnp.bfloat16),
        grid=(Mp // tm,),
        in_specs=[
            pl.BlockSpec((tm, D), lambda i: (i, 0)),    # attn
            pl.BlockSpec((tm, D), lambda i: (i, 0)),    # residual
            pl.BlockSpec((D, D), lambda i: (0, 0)),     # Wo (bf16)
            pl.BlockSpec((1, D), lambda i: (0, 0)),     # bo
            pl.BlockSpec((1, D), lambda i: (0, 0)),     # ln1 gamma
            pl.BlockSpec((1, D), lambda i: (0, 0)),     # ln1 beta
            pl.BlockSpec((D, F), lambda i: (0, 0)),     # W1 (bf16)
            pl.BlockSpec((1, F), lambda i: (0, 0)),     # b1
            pl.BlockSpec((F, D), lambda i: (0, 0)),     # W2 (bf16)
            pl.BlockSpec((1, D), lambda i: (0, 0)),     # b2
            pl.BlockSpec((1, D), lambda i: (0, 0)),     # ln2 gamma
            pl.BlockSpec((1, D), lambda i: (0, 0)),     # ln2 beta
        ],
        out_specs=pl.BlockSpec((tm, D), lambda i: (i, 0)),
        compiler_params=pltpu.CompilerParams(
            dimension_semantics=("parallel",),
            vmem_limit_bytes=_VMEM_LIMIT),
    )(attn, res, p["Wo"], p["bo"].reshape(1, D),
      p["ln1_g"].reshape(1, D), p["ln1_b"].reshape(1, D),
      p["W1"], p["b1"].reshape(1, F), p["W2"], p["b2"].reshape(1, D),
      p["ln2_g"].reshape(1, D), p["ln2_b"].reshape(1, D))
    return out[:M] if Mp != M else out


# ----------------------------------------------------------------------------
# Model pieces (orchestration around the kernels)
# ----------------------------------------------------------------------------
def sinusoidal_pe(L, D):
    pos = jnp.arange(L, dtype=jnp.float32)[:, None]
    i = jnp.arange(D, dtype=jnp.float32)[None, :]
    angle = pos / jnp.power(10000.0, (2.0 * jnp.floor(i / 2.0)) / D)
    return jnp.where((jnp.arange(D) % 2) == 0, jnp.sin(angle), jnp.cos(angle))


def spe_forward(node_feature, edge_index, p):
    """Graph (road-network) node embedding: linear -> neighbor mean -> linear."""
    n_nodes = node_feature.shape[0]
    h = linear(node_feature, p["Wg"], p["bg"], activation="relu")    # (V, D) f32
    src, dst = edge_index[0], edge_index[1]
    # TODO(synk): sparse segment scatter/aggregation (message passing) has no
    # clean Pallas equivalent on TPU; done with jax.ops.segment_sum here.
    msg = h[src]
    agg = jax.ops.segment_sum(msg, dst, num_segments=n_nodes)
    deg = jax.ops.segment_sum(jnp.ones((src.shape[0], 1), jnp.float32), dst,
                              num_segments=n_nodes)
    agg = agg / jnp.maximum(deg, 1.0)
    return linear(h + agg, p["Wn"], p["bn"])                          # (V, D)


def encoder_layer(x, p, temporal_mat, dis_mat, mask3, lambda2, num_heads):
    B, L, D = x.shape
    x_flat = x.reshape(B * L, D)                                      # bf16
    qkv = linear(x_flat, p["Wqkv"], p["bqkv"], out_dtype=jnp.bfloat16)
    attn = fused_attention(qkv.reshape(B, L, 3 * D), temporal_mat, dis_mat,
                           mask3, num_heads=num_heads, lambda2=lambda2)
    h = post_attn_ffn(attn.reshape(B * L, D), x_flat, p)
    return h.reshape(B, L, D)                                         # bf16


def traj_cls_forward(params, node_feature, edge_index, enc_data, lambda2):
    (traj_x, temporal_x, user_id_x, mask, end_idx, _idx_without_end,
     temporal_mat_x, dis_mat_x, highway_x) = enc_data

    spe = spe_forward(node_feature, edge_index, params["spe"])       # (V, D) f32
    ce = params["ce"][highway_x]                                     # (B, L, Dce)
    ue = params["ue"][user_id_x]                                     # (B, 1, D)

    B, L = traj_x.shape
    D = spe.shape[-1]

    tcat = jnp.concatenate([temporal_x, ce], axis=-1)                # (B, L, t+Dce)
    f1 = linear(tcat.reshape(B * L, -1), params["f_w"], params["f_b"],
                activation="relu").reshape(B, L, D)

    x = spe[traj_x] + ue + f1
    x = x + sinusoidal_pe(L, D)[None]
    # enc_dropout: eval mode -> identity.

    # bf16 at every pallas_call boundary: token stream + the bias matrices that
    # are re-streamed every layer (upcast to f32 inside the kernels).
    x = x.astype(jnp.bfloat16)
    tmat = temporal_mat_x.astype(jnp.bfloat16)
    dmat = dis_mat_x.astype(jnp.bfloat16)
    mask3 = mask.astype(jnp.bfloat16).reshape(B, 1, L)

    for layer in params["layers"]:
        x = encoder_layer(x, layer, tmat, dmat, mask3, lambda2,
                          params["num_heads"])

    idx = jnp.broadcast_to(end_idx.astype(jnp.int32)[:, None, None], (B, 1, D))
    traj_emb = jnp.take_along_axis(x, idx, axis=1)[:, 0, :]          # (B, D) bf16

    return linear(traj_emb, params["pre_w"], params["pre_b"])        # (B, n_cls) f32


# ----------------------------------------------------------------------------
# Deterministic parameter construction (matmul weights stored in bf16)
# ----------------------------------------------------------------------------
def init_params(key, *, fea_size, D, ffn, num_heads, depth, user_size,
                highway_size, ce_dim, t_feat, n_cls):
    def nrm(k, shape, scale=0.05, dtype=jnp.bfloat16):
        return (scale * jax.random.normal(k, shape, dtype=jnp.float32)).astype(dtype)

    keys = iter(jax.random.split(key, 64))
    params = {
        "num_heads": num_heads,
        "spe": {
            "Wg": nrm(next(keys), (fea_size, D)), "bg": jnp.zeros((D,), jnp.float32),
            "Wn": nrm(next(keys), (D, D)),        "bn": jnp.zeros((D,), jnp.float32),
        },
        "ce": nrm(next(keys), (highway_size, ce_dim), dtype=jnp.float32),
        "ue": nrm(next(keys), (user_size, D), dtype=jnp.float32),
        "f_w": nrm(next(keys), (t_feat + ce_dim, D)),
        "f_b": jnp.zeros((D,), jnp.float32),
        "pre_w": nrm(next(keys), (D, n_cls)),
        "pre_b": jnp.zeros((n_cls,), jnp.float32),
        "layers": [],
    }
    for _ in range(depth):
        params["layers"].append({
            # Fused Q|K|V projection weight (D, 3D) bf16 and bias (3D,) f32.
            "Wqkv": nrm(next(keys), (D, 3 * D)),
            "bqkv": jnp.zeros((3 * D,), jnp.float32),
            "Wo": nrm(next(keys), (D, D)), "bo": jnp.zeros((D,), jnp.float32),
            "ln1_g": jnp.ones((D,), jnp.float32), "ln1_b": jnp.zeros((D,), jnp.float32),
            "W1": nrm(next(keys), (D, ffn)), "b1": jnp.zeros((ffn,), jnp.float32),
            "W2": nrm(next(keys), (ffn, D)), "b2": jnp.zeros((D,), jnp.float32),
            "ln2_g": jnp.ones((D,), jnp.float32), "ln2_b": jnp.zeros((D,), jnp.float32),
        })
    return params


# ----------------------------------------------------------------------------
# Driver
# ----------------------------------------------------------------------------
if __name__ == "__main__":
    # Small synthetic config consistent with the module's forward.
    V, E = 20, 40          # road-network nodes / edges
    fea_size = 8           # node feature dim
    D = 32                 # enc_embed_dim == dec_embed_dim
    ffn = 64               # enc_ffn_dim
    num_heads = 2
    depth = 2
    user_size = 5
    highway_size = 6
    ce_dim = 16
    t_feat = 8             # temporal feature dim
    B, L = 2, 8
    n_cls = user_size + 1  # non-'cd' dataset branch of pre_linear

    root = jax.random.PRNGKey(0)
    k_par, k_nf, k_ei, k_tr, k_tm, k_uid, k_ei2, k_hm, k_tmat, k_dmat = \
        jax.random.split(root, 10)

    params = init_params(k_par, fea_size=fea_size, D=D, ffn=ffn,
                         num_heads=num_heads, depth=depth, user_size=user_size,
                         highway_size=highway_size, ce_dim=ce_dim,
                         t_feat=t_feat, n_cls=n_cls)

    node_feature = jax.random.normal(k_nf, (V, fea_size), dtype=jnp.float32)
    edge_index = jax.random.randint(k_ei, (2, E), 0, V, dtype=jnp.int32)

    traj_x = jax.random.randint(k_tr, (B, L), 0, V, dtype=jnp.int32)
    temporal_x = jax.random.normal(k_tm, (B, L, t_feat), dtype=jnp.float32)
    user_id_x = jax.random.randint(k_uid, (B, 1), 0, user_size, dtype=jnp.int32)
    mask = jnp.ones((B, L), dtype=jnp.float32)            # all positions valid
    end_idx = jnp.array([L - 1, L - 2], dtype=jnp.int32)  # last valid token idx
    idx_without_end = jnp.tile(jnp.arange(L - 1, dtype=jnp.int32)[None], (B, 1))
    temporal_mat_x = jnp.abs(jax.random.normal(k_tmat, (B, L, L))).astype(jnp.float32)
    dis_mat_x = jnp.abs(jax.random.normal(k_dmat, (B, L, L))).astype(jnp.float32)
    highway_x = jax.random.randint(k_hm, (B, L), 0, highway_size, dtype=jnp.int32)

    enc_data = (traj_x, temporal_x, user_id_x, mask, end_idx, idx_without_end,
                temporal_mat_x, dis_mat_x, highway_x)
    lambda2 = 0.5

    logits = traj_cls_forward(params, node_feature, edge_index, enc_data, lambda2)
    jax.block_until_ready(logits)
    assert logits.shape == (B, n_cls)
    print("KERNEL_OK")
</pallas_src>

<mosaic_0001>
module attributes {stable_mosaic.version = 11 : i64} {
  func.func @_matmul_bias_kernel(%arg0: i32, %arg1: i32, %arg2: i32, %arg3: memref<24x8xbf16, #tpu.memory_space<vmem>>, %arg4: memref<8x32xbf16, #tpu.memory_space<vmem>>, %arg5: memref<1x32xf32, #tpu.memory_space<vmem>>, %arg6: memref<24x32xf32, #tpu.memory_space<vmem>>, %arg7: memref<24x32xf32, #tpu.memory_space<vmem>>) attributes {dimension_semantics = [#tpu.dimension_semantics<parallel>, #tpu.dimension_semantics<parallel>, #tpu.dimension_semantics<arbitrary>], iteration_bounds = array<i64: 1, 1, 1>, scalar_prefetch = 0 : i64, scratch_operands = 1 : i64, tpu.core_type = #tpu.core_type<tc>, window_params = [{transform_indices = @transform_0, window_bounds = array<i64: 24, 8>}, {transform_indices = @transform_1, window_bounds = array<i64: 8, 32>}, {transform_indices = @transform_2, window_bounds = array<i64: 1, 32>}, {transform_indices = @transform_3, window_bounds = array<i64: 24, 32>}]} {
    %c0_i32 = arith.constant 0 : i32
    %0 = arith.cmpi eq, %arg2, %c0_i32 : i32
    %1 = arith.extui %0 : i1 to i32
    %c0_i32_0 = arith.constant 0 : i32
    %2 = arith.cmpi ne, %1, %c0_i32_0 : i32
    scf.if %2 {
      %cst_10 = arith.constant 0.000000e+00 : f32
      %12 = vector.broadcast %cst_10 : f32 to vector<24x32xf32>
      %c0_11 = arith.constant 0 : index
      %c0_12 = arith.constant 0 : index
      %13 = vector.load %arg7[%c0_11, %c0_12] : memref<24x32xf32, #tpu.memory_space<vmem>>, vector<24x32xf32>
      tpu.vector_store %arg7[%c0_11, %c0_12], %12 {strides = array<i32>} : memref<24x32xf32, #tpu.memory_space<vmem>>, vector<24x32xf32>,
    } else {
    }
    %c0 = arith.constant 0 : index
    %c0_1 = arith.constant 0 : index
    %3 = vector.load %arg7[%c0, %c0_1] : memref<24x32xf32, #tpu.memory_space<vmem>>, vector<24x32xf32>
    %c0_2 = arith.constant 0 : index
    %c0_3 = arith.constant 0 : index
    %4 = vector.load %arg3[%c0_2, %c0_3] : memref<24x8xbf16, #tpu.memory_space<vmem>>, vector<24x8xbf16>
    %c0_4 = arith.constant 0 : index
    %c0_5 = arith.constant 0 : index
    %5 = vector.load %arg4[%c0_4, %c0_5] : memref<8x32xbf16, #tpu.memory_space<vmem>>, vector<8x32xbf16>
    %cst = arith.constant dense<0.000000e+00> : vector<24x32xf32>
    %6 = tpu.matmul %4, %5, %cst {dimension_numbers = #tpu.dot_dimension_numbers<[1], [0], [0], [1], [0, 0, 1, 1], [], []>} : vector<24x8xbf16>, vector<8x32xbf16>, vector<24x32xf32> -> vector<24x32xf32>
    %7 = arith.addf %3, %6 : vector<24x32xf32>
    %c0_6 = arith.constant 0 : index
    %c0_7 = arith.constant 0 : index
    %8 = vector.load %arg7[%c0_6, %c0_7] : memref<24x32xf32, #tpu.memory_space<vmem>>, vector<24x32xf32>
    tpu.vector_store %arg7[%c0_6, %c0_7], %7 {strides = array<i32>} : memref<24x32xf32, #tpu.memory_space<vmem>>, vector<24x32xf32>,
    %c0_i32_8 = arith.constant 0 : i32
    %9 = arith.cmpi eq, %arg2, %c0_i32_8 : i32
    %10 = arith.extui %9 : i1 to i32
    %c0_i32_9 = arith.constant 0 : i32
    %11 = arith.cmpi ne, %10, %c0_i32_9 : i32
    scf.if %11 {
      %c0_10 = arith.constant 0 : index
      %c0_11 = arith.constant 0 : index
      %12 = vector.load %arg7[%c0_10, %c0_11] : memref<24x32xf32, #tpu.memory_space<vmem>>, vector<24x32xf32>
      %c0_12 = arith.constant 0 : index
      %c0_13 = arith.constant 0 : index
      %13 = vector.load %arg5[%c0_12, %c0_13] : memref<1x32xf32, #tpu.memory_space<vmem>>, vector<1x32xf32>
      %14 = vector.broadcast %13 : vector<1x32xf32> to vector<24x32xf32>
      %15 = arith.addf %12, %14 : vector<24x32xf32>
      %cst_14 = arith.constant 0.000000e+00 : f32
      %16 = vector.broadcast %cst_14 : f32 to vector<24x32xf32>
      %17 = arith.maximumf %15, %16 : vector<24x32xf32>
      %c0_15 = arith.constant 0 : index
      %c0_16 = arith.constant 0 : index
      %18 = vector.load %arg6[%c0_15, %c0_16] : memref<24x32xf32, #tpu.memory_space<vmem>>, vector<24x32xf32>
      tpu.vector_store %arg6[%c0_15, %c0_16], %17 {strides = array<i32>} : memref<24x32xf32, #tpu.memory_space<vmem>>, vector<24x32xf32>,
    } else {
    }
    return
  }
  func.func @transform_0(%arg0: i32, %arg1: i32, %arg2: i32) -> (i32, i32) {
    %c0_i32 = arith.constant 0 : i32
    return %arg0, %arg2 : i32, i32
  }
  func.func @transform_1(%arg0: i32, %arg1: i32, %arg2: i32) -> (i32, i32) {
    %c0_i32 = arith.constant 0 : i32
    return %arg2, %arg1 : i32, i32
  }
  func.func @transform_2(%arg0: i32, %arg1: i32, %arg2: i32) -> (i32, i32) {
    %c0_i32 = arith.constant 0 : i32
    %c0_i32_0 = arith.constant 0 : i32
    return %c0_i32, %arg1 : i32, i32
  }
  func.func @transform_3(%arg0: i32, %arg1: i32, %arg2: i32) -> (i32, i32) {
    %c0_i32 = arith.constant 0 : i32
    return %arg0, %arg1 : i32, i32
  }
}

</mosaic_0001>

<bundles_post_ra>
// kernel: tpu_custom_call.1
= control target key start
LH: loop header
LB: loop body
LE: loop exit
PB: predicated region body
PF: predicated region fallthrough
CT: control target
= control target key end

     0   :  { %vm46_vm0 = vcmask 1043456   ;;  %vm39_vm1 = vcmask 64512   ;;  %vm20_vm2 = vcmask 261120   ;;  %s245_s0 = inlined_call_operand.vmem [shape: bf16[24,8], index: 0, kind: input, shape index: {}]   ;;  %s246_s1 = inlined_call_operand.vmem [shape: bf16[8,32], index: 1, kind: input, shape index: {}]   ;;  %s247_s2 = inlined_call_operand.vmem [shape: f32[1,32], index: 2, kind: input, shape index: {}]   ;;  %s248_s3 = inlined_call_operand.hbm [shape: f32[24,32], index: 3, kind: output, shape index: {}]  }
   0x1   :  { %v30_v0 = vld [vmem:[%s246_s1] sm:$0xf]  ;;  %v163_v3 = vld [vmem:[%s245_s0 + $0x8] ss:$0 sps:$4 sm:$0xff]  }
   0x2   :  { %v162_v1 = vld [vmem:[%s245_s0] sm:$0xff]   ;;  %157 = vmatprep.subr.msk.bf16.mxu0 %vm46_vm0, %v30_v0  ;;  %v48_v2 = vsel %vm46_vm0, %v30_v0, 0 }
   0x3   :  { %152 = vmatpush3.bf16.msra.mxu0 %v48_v2  ;;  %153 = vmatprep.mubr.msk.bf16.mxu0 %vm39_vm1, %v162_v1 }
   0x4   :  { %8 = vsyncpa [#allocation4], 0  ;;  %v188_v4 = vmov 0.0   ;;  %v147_v15 = vld [vmem:[%s247_s2] ss:$0 sm:$0xff]  ;;  %s189_s18 = smov [#allocation3]  }
   0x5   :  { %23 = vst.msk [vmem:[#allocation2 + $0x10] sm:$0xff] %vm20_vm2, %v188_v4  ;;  %21 = vst.msk [vmem:[#allocation2] sm:$0xff] %vm20_vm2, %v188_v4  ;;  %s132_s19 = sshll.u32 %s189_s18, 4  ;;  %s133_s19 = int_to_ptr.vmem [resolvable:$true] %s132_s19 }
   0x6   :  { %22 = vst.msk [vmem:[#allocation2 + $0x8] sm:$0xff] %vm20_vm2, %v188_v4  ;;  %154 = vmatmul.mubr.msk.bf16.vlgmr.msra.gmra.mrb[0].mxu0 %vm39_vm1, %v163_v3  ;;  %s164_s20 = scalar_lea.vmem %s133_s19, 384  ;;  %p169_p1 = scmp.lt.s32.totalorder %s133_s19, %s133_s19 }
   0x7   :  { %p165_p0 = scmp.ne.s32.totalorder %s133_s19, %s164_s20  ;;  %p170_p2 = scmp.lt.s32.totalorder %s164_s20, %s164_s20 }
   0x9   :  { %p171_p3 = por %p170_p2, %p169_p1 }
   0xb   :  { %p172_p4 = pnand %p171_p3, %p165_p0 }
   0xc   :  { %v26_v5 = vld [vmem:[#allocation2 + $0x10] sm:$0xff]  ;;  %v24_v6 = vld [vmem:[#allocation2] sm:$0xff] }
   0xd   :  { %v25_v10 = vld [vmem:[#allocation2 + $0x8] sm:$0xff] }
  0xd9   :  { %v155_v7 = vpop.f32.mrb[0].mxu0 }
  0xda   :  { %v100_v8 = vadd.f32 %v155_v7, %v26_v5  ;;  %v84_v9 = vpop.f32.mrb[1].mxu0 }
  0xdb   :  { %v98_v11 = vadd.f32 %v84_v9, %v24_v6  ;;  %v156_v12 = vpop.f32.mrb[2].mxu0 }
  0xdc   :  { %104 = vst.msk [vmem:[#allocation2 + $0x10] sm:$0xff] %vm20_vm2, %v100_v8  ;;  %v87_v13 = vpop.f32.mrb[3].mxu0 }
  0xdd   :  { %102 = vst.msk [vmem:[#allocation2] sm:$0xff] %vm20_vm2, %v98_v11  ;;  %v99_v14 = vadd.f32 %v87_v13, %v25_v10 }
  0xdf   :  { %103 = vst.msk [vmem:[#allocation2 + $0x8] sm:$0xff] %vm20_vm2, %v99_v14 }
  0xe3   :  { %v110_v16 = vld [vmem:[#allocation2 + $0x10] sm:$0xff] }
  0xe4   :  { %v108_v17 = vld [vmem:[#allocation2] sm:$0xff]  ;;  %v120_v18 = vadd.f32 %v147_v15, %v110_v16 }
  0xe5   :  { %v118_v19 = vadd.f32 %v147_v15, %v108_v17 }
  0xe6   :  { %v109_v20 = vld [vmem:[#allocation2 + $0x8] sm:$0xff]  ;;  %v123_v21 = vmax.f32 %v120_v18, 0.0 }
  0xe7   :  { %v119_v22 = vadd.f32 %v147_v15, %v109_v20  ;;  %v121_v23 = vmax.f32 %v118_v19, 0.0 }
  0xe8   :  { %126 = vst.msk [vmem:[#allocation3 + $0x10] sm:$0xff] %vm20_vm2, %v123_v21 }
  0xe9   :  { %v122_v24 = vmax.f32 %v119_v22, 0.0  ;;  %124 = vst.msk [vmem:[#allocation3] sm:$0xff] %vm20_vm2, %v121_v23 }
  0xeb   :  { %125 = vst.msk [vmem:[#allocation3 + $0x8] sm:$0xff] %vm20_vm2, %v122_v24 }
  0xec   :  { %175 = shalt.err (!%p172_p4)
}
  0xed   :  { %s176_s22 = scalar_lea.hbm %s248_s3, 384 }
  0xee   :  { %p177_p5 = scmp.ne.s32.totalorder %s248_s3, %s176_s22  ;;  %p180_p6 = scmp.lt.u32.totalorder %s176_s22, %s248_s3 }
  0xf0   :  { %p182_p7 = pnand %p180_p6, %p177_p5 }
  0xf2   :  { %185 = shalt.err (!%p182_p7)
}
  0xf3   :  { %s190_s27 = smov 128   ;;  %s191_s28 = smov 8  }
  0xf4   :  { %138 = dma.vmem_to_hbm [thread:$0]  %s133_s19, 384, %s248_s3, [#allocation4], %s190_s27, %s190_s27, %s191_s28  }
  0xf5   :  { %186 = dma.done.wait [#allocation4], 384  }
  0xf6   :  { %187 = vsyncadd [#allocation4], 4294966912 }
  0xf7   :  { %142 = vsyncpa [#allocation4], 1 }

</bundles_post_ra>
